<compile_context>
chip_gen: v7x
topology: tpu7x:2x2x1
jax: 0.10.0
libtpu: 0.0.40
codegen_flags: <defaults>
</compile_context>

<pallas_src>
import functools

import jax
import jax.numpy as jnp
from jax.experimental import pallas as pl
from jax.experimental.pallas import tpu as pltpu


LANE = 128      # lane width: pad feature dims to this
SUBLANE = 8     # sublane width: batch tiles are multiples of this
VMEM_BUDGET = 24 * 1024 * 1024          # working-set budget used for tile sizing
VMEM_LIMIT = 32 * 1024 * 1024           # scoped-VMEM limit passed to Mosaic


def _round_up(x, m):
    return ((x + m - 1) // m) * m


# ---------------------------------------------------------------------------
# Kernel
# ---------------------------------------------------------------------------
def sparse_memory_kernel(x_ref, we_ref, be_ref, wd_ref, bd_ref,
                         dec_ref, enc_ref):
    # x:  [TB, E_pad] bf16      we: [E_pad, C_pad] bf16   be: [1, C_pad] f32
    # wd: [C_pad, E_pad] bf16   bd: [1, E_pad] f32
    x = x_ref[...]                                           # bf16, no cast

    # encoder + ReLU (bf16 MXU matmul, f32 accumulation)
    enc = jnp.dot(x, we_ref[...], preferred_element_type=jnp.float32)
    enc = jnp.maximum(enc + be_ref[...], 0.0)                # f32

    # decoder + sigmoid (re-feed MXU with bf16 operands)
    z = jnp.dot(enc.astype(jnp.bfloat16), wd_ref[...],
                preferred_element_type=jnp.float32)
    z = z + bd_ref[...]
    # sigmoid = 1 / (1 + exp(-z)); exp on EUP, approx reciprocal on EUP slot.
    dec_ref[...] = pl.reciprocal(1.0 + jnp.exp(-z), approx=True)
    enc_ref[...] = enc


# ---------------------------------------------------------------------------
# One-time parameter preparation (hoisted out of the per-call forward path)
# ---------------------------------------------------------------------------
def prepare_params(w_enc, b_enc, w_dec, b_dec):
    """Transpose to [in, out], cast weights to bf16, pad feature dims to 128.

    Done ONCE; the forward pass never re-transposes or re-pads weights.
    """
    C, E = w_enc.shape
    E_pad = _round_up(E, LANE)
    C_pad = _round_up(C, LANE)

    we = jnp.zeros((E_pad, C_pad), jnp.bfloat16)
    we = we.at[:E, :C].set(jnp.asarray(w_enc, jnp.bfloat16).T)     # [E_pad, C_pad]
    wd = jnp.zeros((C_pad, E_pad), jnp.bfloat16)
    wd = wd.at[:C, :E].set(jnp.asarray(w_dec, jnp.bfloat16).T)     # [C_pad, E_pad]
    be = jnp.zeros((1, C_pad), jnp.float32).at[0, :C].set(
        jnp.asarray(b_enc, jnp.float32))
    bd = jnp.zeros((1, E_pad), jnp.float32).at[0, :E].set(
        jnp.asarray(b_dec, jnp.float32))

    return {"we": we, "be": be, "wd": wd, "bd": bd,
            "E": E, "C": C, "E_pad": E_pad, "C_pad": C_pad}


def _pick_batch_tile(batch, e_pad, c_pad, vmem_budget_bytes=VMEM_BUDGET):
    """Batch tile: multiple of 8, as large as reasonable, fits VMEM budget."""
    # Resident weights (bf16) + biases (f32). Count them double-buffered to be
    # conservative (Pallas allocates 2 buffers per pipelined input by default,
    # even when the block index never changes).
    weight_bytes = 2 * (2 * e_pad * c_pad * 2 + (e_pad + c_pad) * 4)
    # Per batch-row bytes, double-buffered: x (bf16 in), dec (f32 out), enc (f32 out).
    per_row = 2 * (e_pad * 2 + e_pad * 4 + c_pad * 4)
    budget = max(vmem_budget_bytes - weight_bytes, per_row * SUBLANE)
    tb = min(512, budget // per_row, _round_up(batch, SUBLANE))
    tb = max(SUBLANE, (tb // SUBLANE) * SUBLANE)
    return int(tb)
    # TODO(synk): if the padded weights alone exceed the VMEM budget (very wide
    # layers), add a K/N tiling grid axis instead of keeping weights resident.


# ---------------------------------------------------------------------------
# Forward pass
# ---------------------------------------------------------------------------
@jax.jit
def _forward_prepared(event, we, be, wd, bd):
    B, E = event.shape
    E_pad, C_pad = we.shape
    TB = _pick_batch_tile(B, E_pad, C_pad)
    B_pad = _round_up(B, TB)

    # Per-call glue: cast activations to bf16 and pad batch / feature dims.
    x = jnp.zeros((B_pad, E_pad), jnp.bfloat16)
    x = x.at[:B, :E].set(event.astype(jnp.bfloat16))

    grid = (B_pad // TB,)

    cost = pl.CostEstimate(
        flops=4 * B_pad * E_pad * C_pad,            # two matmuls, 2*M*N*K each
        transcendentals=B_pad * E_pad,              # exp in sigmoid
        bytes_accessed=(B_pad * E_pad * 2           # x (bf16)
                        + 2 * E_pad * C_pad * 2     # both weights (bf16)
                        + B_pad * E_pad * 4         # decoded (f32)
                        + B_pad * C_pad * 4),       # encoded (f32)
    )

    dec_pad, enc_pad = pl.pallas_call(
        sparse_memory_kernel,
        out_shape=(
            jax.ShapeDtypeStruct((B_pad, E_pad), jnp.float32),   # decoded
            jax.ShapeDtypeStruct((B_pad, C_pad), jnp.float32),   # encoded
        ),
        grid=grid,
        in_specs=[
            pl.BlockSpec((TB, E_pad), lambda i: (i, 0)),         # x (pipelined)
            pl.BlockSpec((E_pad, C_pad), lambda i: (0, 0)),      # W_enc (resident)
            pl.BlockSpec((1, C_pad), lambda i: (0, 0)),          # b_enc (resident)
            pl.BlockSpec((C_pad, E_pad), lambda i: (0, 0)),      # W_dec (resident)
            pl.BlockSpec((1, E_pad), lambda i: (0, 0)),          # b_dec (resident)
        ],
        out_specs=(
            pl.BlockSpec((TB, E_pad), lambda i: (i, 0)),
            pl.BlockSpec((TB, C_pad), lambda i: (i, 0)),
        ),
        compiler_params=pltpu.CompilerParams(
            dimension_semantics=("parallel",),                   # megacore on v7x
            vmem_limit_bytes=VMEM_LIMIT,                         # safe on v5e/v6e/v7x
        ),
        cost_estimate=cost,
    )(x, we, be, wd, bd)

    return dec_pad, enc_pad


def sparse_memory_forward(event, params):
    """event: [B, E]; params from prepare_params().

    Returns (decoded [B, E] f32, encoded [B, C] f32), matching the PyTorch module.
    """
    B = event.shape[0]
    E, C = params["E"], params["C"]
    dec_pad, enc_pad = _forward_prepared(
        event, params["we"], params["be"], params["wd"], params["bd"])
    return dec_pad[:B, :E], enc_pad[:B, :C]


# ---------------------------------------------------------------------------
# Init mimicking nn.Linear's uniform(-1/sqrt(fan_in), +1/sqrt(fan_in))
# ---------------------------------------------------------------------------
def init_params(key, event_size, compressed_size):
    k1, k2, k3, k4 = jax.random.split(key, 4)
    bound_e = 1.0 / jnp.sqrt(event_size)
    bound_d = 1.0 / jnp.sqrt(compressed_size)
    w_enc = jax.random.uniform(k1, (compressed_size, event_size),
                               jnp.float32, -bound_e, bound_e)
    b_enc = jax.random.uniform(k2, (compressed_size,),
                               jnp.float32, -bound_e, bound_e)
    w_dec = jax.random.uniform(k3, (event_size, compressed_size),
                               jnp.float32, -bound_d, bound_d)
    b_dec = jax.random.uniform(k4, (event_size,),
                               jnp.float32, -bound_d, bound_d)
    return w_enc, b_enc, w_dec, b_dec


if __name__ == "__main__":
    event_size = 32
    compressed_size = 16
    batch = 8

    key = jax.random.PRNGKey(0)
    k_x, k_p = jax.random.split(key)
    event = jax.random.normal(k_x, (batch, event_size), jnp.float32)
    w_enc, b_enc, w_dec, b_dec = init_params(k_p, event_size, compressed_size)

    # One-time parameter prep (transpose / bf16 cast / lane padding).
    params = prepare_params(w_enc, b_enc, w_dec, b_dec)

    decoded, encoded = sparse_memory_forward(event, params)
    jax.block_until_ready((decoded, encoded))

    # Reference check in plain JAX (f32). bf16 MXU operands + approx reciprocal
    # => loosen tolerance vs the pure-f32 reference.
    enc_ref = jnp.maximum(event @ w_enc.T + b_enc, 0.0)
    dec_ref = jax.nn.sigmoid(enc_ref @ w_dec.T + b_dec)
    assert decoded.shape == (batch, event_size)
    assert encoded.shape == (batch, compressed_size)
    assert jnp.allclose(encoded, enc_ref, atol=2e-2, rtol=2e-2), "encoded mismatch"
    assert jnp.allclose(decoded, dec_ref, atol=2e-2, rtol=2e-2), "decoded mismatch"

    print("KERNEL_OK")
</pallas_src>

<mosaic_0001>
module attributes {stable_mosaic.version = 11 : i64} {
  func.func @sparse_memory_kernel(%arg0: i32, %arg1: memref<8x128xbf16, #tpu.memory_space<vmem>>, %arg2: memref<128x128xbf16, #tpu.memory_space<vmem>>, %arg3: memref<1x128xf32, #tpu.memory_space<vmem>>, %arg4: memref<128x128xbf16, #tpu.memory_space<vmem>>, %arg5: memref<1x128xf32, #tpu.memory_space<vmem>>, %arg6: memref<8x128xf32, #tpu.memory_space<vmem>>, %arg7: memref<8x128xf32, #tpu.memory_space<vmem>>) attributes {dimension_semantics = [#tpu.dimension_semantics<parallel>], iteration_bounds = array<i64: 1>, scalar_prefetch = 0 : i64, scratch_operands = 0 : i64, tpu.core_type = #tpu.core_type<tc>, window_params = [{transform_indices = @transform_0, window_bounds = array<i64: 8, 128>}, {pipeline_mode = #tpu.pipeline_mode<synchronous>, transform_indices = @transform_1, window_bounds = array<i64: 128, 128>}, {pipeline_mode = #tpu.pipeline_mode<synchronous>, transform_indices = @transform_2, window_bounds = array<i64: 1, 128>}, {pipeline_mode = #tpu.pipeline_mode<synchronous>, transform_indices = @transform_3, window_bounds = array<i64: 128, 128>}, {pipeline_mode = #tpu.pipeline_mode<synchronous>, transform_indices = @transform_4, window_bounds = array<i64: 1, 128>}, {transform_indices = @transform_5, window_bounds = array<i64: 8, 128>}, {transform_indices = @transform_6, window_bounds = array<i64: 8, 128>}]} {
    %c0 = arith.constant 0 : index
    %c0_0 = arith.constant 0 : index
    %0 = vector.load %arg1[%c0, %c0_0] : memref<8x128xbf16, #tpu.memory_space<vmem>>, vector<8x128xbf16>
    %c0_1 = arith.constant 0 : index
    %c0_2 = arith.constant 0 : index
    %1 = vector.load %arg2[%c0_1, %c0_2] : memref<128x128xbf16, #tpu.memory_space<vmem>>, vector<128x128xbf16>
    %cst = arith.constant dense<0.000000e+00> : vector<8x128xf32>
    %2 = tpu.matmul %0, %1, %cst {dimension_numbers = #tpu.dot_dimension_numbers<[1], [0], [0], [1], [0, 0, 1, 1], [], []>} : vector<8x128xbf16>, vector<128x128xbf16>, vector<8x128xf32> -> vector<8x128xf32>
    %c0_3 = arith.constant 0 : index
    %c0_4 = arith.constant 0 : index
    %3 = vector.load %arg3[%c0_3, %c0_4] : memref<1x128xf32, #tpu.memory_space<vmem>>, vector<1x128xf32>
    %4 = vector.broadcast %3 : vector<1x128xf32> to vector<8x128xf32>
    %5 = arith.addf %2, %4 : vector<8x128xf32>
    %cst_5 = arith.constant 0.000000e+00 : f32
    %6 = vector.broadcast %cst_5 : f32 to vector<8x128xf32>
    %7 = arith.maximumf %5, %6 : vector<8x128xf32>
    %8 = arith.truncf %7 : vector<8x128xf32> to vector<8x128xbf16>
    %c0_6 = arith.constant 0 : index
    %c0_7 = arith.constant 0 : index
    %9 = vector.load %arg4[%c0_6, %c0_7] : memref<128x128xbf16, #tpu.memory_space<vmem>>, vector<128x128xbf16>
    %cst_8 = arith.constant dense<0.000000e+00> : vector<8x128xf32>
    %10 = tpu.matmul %8, %9, %cst_8 {dimension_numbers = #tpu.dot_dimension_numbers<[1], [0], [0], [1], [0, 0, 1, 1], [], []>} : vector<8x128xbf16>, vector<128x128xbf16>, vector<8x128xf32> -> vector<8x128xf32>
    %c0_9 = arith.constant 0 : index
    %c0_10 = arith.constant 0 : index
    %11 = vector.load %arg5[%c0_9, %c0_10] : memref<1x128xf32, #tpu.memory_space<vmem>>, vector<1x128xf32>
    %12 = vector.broadcast %11 : vector<1x128xf32> to vector<8x128xf32>
    %13 = arith.addf %10, %12 : vector<8x128xf32>
    %cst_11 = arith.constant 0.000000e+00 : f32
    %14 = vector.broadcast %cst_11 : f32 to vector<8x128xf32>
    %15 = arith.subf %14, %13 : vector<8x128xf32>
    %16 = math.exp %15 : vector<8x128xf32>
    %cst_12 = arith.constant 1.000000e+00 : f32
    %17 = vector.broadcast %cst_12 : f32 to vector<8x128xf32>
    %18 = arith.addf %17, %16 : vector<8x128xf32>
    %19 = tpu.reciprocal %18 {approx = true} : vector<8x128xf32> -> vector<8x128xf32>
    %c0_13 = arith.constant 0 : index
    %c0_14 = arith.constant 0 : index
    %20 = vector.load %arg6[%c0_13, %c0_14] : memref<8x128xf32, #tpu.memory_space<vmem>>, vector<8x128xf32>
    tpu.vector_store %arg6[%c0_13, %c0_14], %19 {strides = array<i32>} : memref<8x128xf32, #tpu.memory_space<vmem>>, vector<8x128xf32>,
    %c0_15 = arith.constant 0 : index
    %c0_16 = arith.constant 0 : index
    %21 = vector.load %arg7[%c0_15, %c0_16] : memref<8x128xf32, #tpu.memory_space<vmem>>, vector<8x128xf32>
    tpu.vector_store %arg7[%c0_15, %c0_16], %7 {strides = array<i32>} : memref<8x128xf32, #tpu.memory_space<vmem>>, vector<8x128xf32>,
    return
  }
  func.func @transform_0(%arg0: i32) -> (i32, i32) {
    %c0_i32 = arith.constant 0 : i32
    %c0_i32_0 = arith.constant 0 : i32
    return %arg0, %c0_i32 : i32, i32
  }
  func.func @transform_1(%arg0: i32) -> (i32, i32) {
    %c0_i32 = arith.constant 0 : i32
    %c0_i32_0 = arith.constant 0 : i32
    %c0_i32_1 = arith.constant 0 : i32
    return %c0_i32, %c0_i32_0 : i32, i32
  }
  func.func @transform_2(%arg0: i32) -> (i32, i32) {
    %c0_i32 = arith.constant 0 : i32
    %c0_i32_0 = arith.constant 0 : i32
    %c0_i32_1 = arith.constant 0 : i32
    return %c0_i32, %c0_i32_0 : i32, i32
  }
  func.func @transform_3(%arg0: i32) -> (i32, i32) {
    %c0_i32 = arith.constant 0 : i32
    %c0_i32_0 = arith.constant 0 : i32
    %c0_i32_1 = arith.constant 0 : i32
    return %c0_i32, %c0_i32_0 : i32, i32
  }
  func.func @transform_4(%arg0: i32) -> (i32, i32) {
    %c0_i32 = arith.constant 0 : i32
    %c0_i32_0 = arith.constant 0 : i32
    %c0_i32_1 = arith.constant 0 : i32
    return %c0_i32, %c0_i32_0 : i32, i32
  }
  func.func @transform_5(%arg0: i32) -> (i32, i32) {
    %c0_i32 = arith.constant 0 : i32
    %c0_i32_0 = arith.constant 0 : i32
    return %arg0, %c0_i32 : i32, i32
  }
  func.func @transform_6(%arg0: i32) -> (i32, i32) {
    %c0_i32 = arith.constant 0 : i32
    %c0_i32_0 = arith.constant 0 : i32
    return %arg0, %c0_i32 : i32, i32
  }
}

</mosaic_0001>

<bundles_post_ra>
// kernel: _forward_prepared.1
= control target key start
LH: loop header
LB: loop body
LE: loop exit
PB: predicated region body
PF: predicated region fallthrough
CT: control target
= control target key end

     0   :  { %12 = vsyncpa [#allocation3], 0  ;;  %s615_s0 = inlined_call_operand.vmem [shape: bf16[8,128], index: 0, kind: input, shape index: {}]   ;;  %s616_s1 = inlined_call_operand.hbm [shape: bf16[128,128], index: 1, kind: input, shape index: {}]   ;;  %s617_s2 = inlined_call_operand.vmem [shape: f32[1,128], index: 2, kind: input, shape index: {}]   ;;  %s618_s3 = inlined_call_operand.hbm [shape: bf16[128,128], index: 3, kind: input, shape index: {}]   ;;  %s619_s4 = inlined_call_operand.vmem [shape: f32[1,128], index: 4, kind: input, shape index: {}]   ;;  %s620_s5 = inlined_call_operand.hbm [shape: f32[8,128], index: 5, kind: output, shape index: {0}]   ;;  %s621_s6 = inlined_call_operand.hbm [shape: f32[8,128], index: 6, kind: output, shape index: {1}]  }
   0x1   :  { %13 = vsyncpa [#allocation6], 0 }
   0x2   :  { %14 = vsyncpa [#allocation4], 0 }
   0x3   :  { %15 = vsyncpa [#allocation9], 0  ;;  %s515_s21 = smov [#allocation2]   ;;  %s419_s25 = scalar_lea.hbm %s616_s1, 1024 }
   0x4   :  { %s23_s22 = sshll.u32 %s515_s21, 4  ;;  %p420_p0 = scmp.ne.s32.totalorder %s616_s1, %s419_s25  ;;  %s24_s22 = int_to_ptr.vmem [resolvable:$true] %s23_s22 }
   0x5   :  { %p423_p1 = scmp.lt.u32.totalorder %s419_s25, %s616_s1 }
   0x7   :  { %p425_p2 = pnand %p423_p1, %p420_p0 }
   0x9   :  { %428 = shalt.err (!%p425_p2)
}
   0xa   :  { %s429_s30 = scalar_lea.vmem %s24_s22, 1024  ;;  %p434_p4 = scmp.lt.s32.totalorder %s24_s22, %s24_s22 }
   0xb   :  { %p430_p3 = scmp.ne.s32.totalorder %s24_s22, %s429_s30  ;;  %p435_p5 = scmp.lt.s32.totalorder %s429_s30, %s429_s30 }
   0xd   :  { %p436_p6 = por %p435_p5, %p434_p4 }
   0xf   :  { %p437_p7 = pnand %p436_p6, %p430_p3 }
  0x11   :  { %440 = shalt.err (!%p437_p7)
}
  0x12   :  { %s516_s7 = smov 64   ;;  %s517_s8 = smov 4  }
  0x13   :  { %29 = dma.hbm_to_vmem [thread:$0]  %s616_s1, 1024, %s24_s22, [#allocation3], %s516_s7, %s516_s7, %s517_s8  }
  0x14   :  { %s518_s11 = smov [#allocation5]   ;;  %s441_s15 = scalar_lea.hbm %s618_s3, 1024 }
  0x15   :  { %s37_s12 = sshll.u32 %s518_s11, 4  ;;  %p442_p8 = scmp.ne.s32.totalorder %s618_s3, %s441_s15  ;;  %s38_s12 = int_to_ptr.vmem [resolvable:$true] %s37_s12 }
  0x16   :  { %p445_p9 = scmp.lt.u32.totalorder %s441_s15, %s618_s3 }
  0x18   :  { %p447_p10 = pnand %p445_p9, %p442_p8 }
  0x1a   :  { %450 = shalt.err (!%p447_p10)
}
  0x1b   :  { %s451_s20 = scalar_lea.vmem %s38_s12, 1024  ;;  %p456_p12 = scmp.lt.s32.totalorder %s38_s12, %s38_s12 }
  0x1c   :  { %p452_p11 = scmp.ne.s32.totalorder %s38_s12, %s451_s20  ;;  %p457_p13 = scmp.lt.s32.totalorder %s451_s20, %s451_s20 }
  0x1e   :  { %p458_p0 = por %p457_p13, %p456_p12 }
  0x20   :  { %p459_p1 = pnand %p458_p0, %p452_p11 }
  0x22   :  { %462 = shalt.err (!%p459_p1)
}
  0x23   :  { %43 = dma.hbm_to_vmem [thread:$0]  %s618_s3, 1024, %s38_s12, [#allocation6], %s516_s7, %s516_s7, %s517_s8  }
  0x24   :  { %507 = dma.done.wait [#allocation3], 1024  }
  0x25   :  { %508 = vsyncadd [#allocation3], 4294966272 }
  0x26   :  { %509 = dma.done.wait [#allocation6], 1024  }
  0x27   :  { %510 = vsyncadd [#allocation6], 4294966272  ;;  %v519_v0 = vmov 0.0   ;;  %vm520_vm0 = vmmov 0   ;;  %v399_v1 = vld [vmem:[#allocation2] sm:$0xff]   ;;  %v400_v2 = vld [vmem:[#allocation2 + $0x8] sm:$0xff]  }
  0x28   :  { %351 = vmatprep.subr.bf16.mxu0 %v519_v0  ;;  %367 = vmatprep.mubr.msk.bf16.mxu0 %vm520_vm0, %v519_v0  ;;  %v401_v3 = vld [vmem:[#allocation2 + $0x10] sm:$0xff]   ;;  %v407_v4 = vld [vmem:[#allocation5] sm:$0xff]   ;;  %v402_v5 = vld [vmem:[#allocation2 + $0x18] sm:$0xff]  }
  0x29   :  { %371 = vmatprep.subr.bf16.mxu1 %v519_v0  ;;  %387 = vmatprep.mubr.msk.bf16.mxu1 %vm520_vm0, %v519_v0  ;;  %v408_v6 = vld [vmem:[#allocation5 + $0x8] sm:$0xff]   ;;  %v403_v7 = vld [vmem:[#allocation2 + $0x20] sm:$0xff]   ;;  %v409_v8 = vld [vmem:[#allocation5 + $0x10] sm:$0xff]  }
  0x2a   :  { %352 = vmatpush3.bf16.msra.mxu0 %v399_v1  ;;  %372 = vmatpush3.bf16.msra.mxu1 %v407_v4  ;;  %v404_v9 = vld [vmem:[#allocation2 + $0x28] sm:$0xff]   ;;  %v410_v10 = vld [vmem:[#allocation5 + $0x18] sm:$0xff]   ;;  %v405_v11 = vld [vmem:[#allocation2 + $0x30] sm:$0xff]  }
  0x2b   :  { %353 = vmatprep.subr.bf16.mxu0 %v519_v0  ;;  %373 = vmatprep.subr.bf16.mxu1 %v519_v0  ;;  %v411_v12 = vld [vmem:[#allocation5 + $0x20] sm:$0xff]   ;;  %v406_v13 = vld [vmem:[#allocation2 + $0x38] sm:$0xff]   ;;  %v412_v14 = vld [vmem:[#allocation5 + $0x28] sm:$0xff]  }
  0x2c   :  { %v53_v15 = vld [vmem:[%s615_s0] sm:$0xf]  ;;  %v413_v16 = vld [vmem:[#allocation5 + $0x30] sm:$0xff]   ;;  %v414_v17 = vld [vmem:[#allocation5 + $0x38] sm:$0xff]   ;;  %s521_s0 = smov [#allocation8]  }
  0x2d   :  { %v315_v18 = vld [vmem:[%s617_s2] ss:$0 sm:$0xff]  ;;  %s301_s25 = sshll.u32 %s521_s0, 4  ;;  %s302_s25 = int_to_ptr.vmem [resolvable:$true] %s301_s25 }
  0x2e   :  { %354 = vmatpush3.bf16.msra.mxu0 %v400_v2  ;;  %374 = vmatpush3.bf16.msra.mxu1 %v408_v6  ;;  %s463_s26 = scalar_lea.vmem %s302_s25, 128  ;;  %p468_p3 = scmp.lt.s32.totalorder %s302_s25, %s302_s25 }
  0x2f   :  { %355 = vmatprep.subr.bf16.mxu0 %v519_v0  ;;  %375 = vmatprep.subr.bf16.mxu1 %v519_v0  ;;  %p464_p2 = scmp.ne.s32.totalorder %s302_s25, %s463_s26  ;;  %p469_p4 = scmp.lt.s32.totalorder %s463_s26, %s463_s26 }
  0x31   :  { %p470_p5 = por %p469_p4, %p468_p3 }
  0x32   :  { %356 = vmatpush3.bf16.msra.mxu0 %v401_v3  ;;  %376 = vmatpush3.bf16.msra.mxu1 %v409_v8 }
  0x33   :  { %357 = vmatprep.subr.bf16.mxu0 %v519_v0  ;;  %377 = vmatprep.subr.bf16.mxu1 %v519_v0  ;;  %p471_p6 = pnand %p470_p5, %p464_p2 }
  0x36   :  { %358 = vmatpush3.bf16.msra.mxu0 %v402_v5  ;;  %378 = vmatpush3.bf16.msra.mxu1 %v410_v10 }
  0x37   :  { %359 = vmatprep.subr.bf16.mxu0 %v519_v0  ;;  %379 = vmatprep.subr.bf16.mxu1 %v519_v0 }
  0x3a   :  { %360 = vmatpush3.bf16.msra.mxu0 %v403_v7  ;;  %380 = vmatpush3.bf16.msra.mxu1 %v411_v12 }
  0x3b   :  { %361 = vmatprep.subr.bf16.mxu0 %v519_v0  ;;  %381 = vmatprep.subr.bf16.mxu1 %v519_v0 }
  0x3e   :  { %362 = vmatpush3.bf16.msra.mxu0 %v404_v9  ;;  %382 = vmatpush3.bf16.msra.mxu1 %v412_v14 }
  0x3f   :  { %363 = vmatprep.subr.bf16.mxu0 %v519_v0  ;;  %383 = vmatprep.subr.bf16.mxu1 %v519_v0 }
  0x42   :  { %364 = vmatpush3.bf16.msra.mxu0 %v405_v11  ;;  %384 = vmatpush3.bf16.msra.mxu1 %v413_v16 }
  0x43   :  { %365 = vmatprep.subr.bf16.mxu0 %v519_v0  ;;  %385 = vmatprep.subr.bf16.mxu1 %v519_v0 }
  0x46   :  { %366 = vmatpush3.bf16.msra.mxu0 %v406_v13  ;;  %386 = vmatpush3.bf16.msra.mxu1 %v414_v17 }
  0x49   :  { %368 = vmatmul.mubr.bf16.vlgmr.msra.gmra.mrb[0].mxu0 %v53_v15 }
 0x11c   :  { %v159_v19 = vpop.f32.mrb[0].mxu0 }
 0x11d   :  { %v160_v20 = vadd.f32 %v315_v18, %v159_v19  ;;  %v369_v21 = vpop.f32.mrb[1].mxu0 }
 0x11e   :  { %v162_v22 = vpop.f32.mrb[2].mxu0 }
 0x11f   :  { %v165_v23 = vmax.f32 %v160_v20, 0.0  ;;  %v370_v24 = vpop.f32.mrb[3].mxu0 }
 0x121   :  { %v166_v25 = vpack.c.bf16 %v165_v23, %v165_v23  ;;  %284 = vst [vmem:[#allocation8] sm:$0xff] %v165_v23 }
 0x123   :  { %388 = vmatmul.mubr.bf16.vlgmr.msra.gmra.mrb[0].mxu1 %v166_v25 }
 0x124   :  { %474 = shalt.err (!%p471_p6)
}
 0x125   :  { %s475_s28 = scalar_lea.hbm %s621_s6, 128 }
 0x126   :  { %p476_p7 = scmp.ne.s32.totalorder %s621_s6, %s475_s28  ;;  %p479_p8 = scmp.lt.u32.totalorder %s475_s28, %s621_s6 }
 0x128   :  { %p481_p9 = pnand %p479_p8, %p476_p7 }
 0x12a   :  { %484 = shalt.err (!%p481_p9)
}
 0x12b   :  { %304 = dma.vmem_to_hbm [thread:$0]  %s302_s25, 128, %s621_s6, [#allocation9]   ;;  %v324_v26 = vld [vmem:[%s619_s4] ss:$0 sm:$0xff] }
 0x12c   :  { %s522_s13 = smov [#allocation7]  }
 0x12d   :  { %s291_s14 = sshll.u32 %s522_s13, 4  ;;  %s292_s14 = int_to_ptr.vmem [resolvable:$true] %s291_s14 }
 0x12e   :  { %s485_s6 = scalar_lea.vmem %s292_s14, 128  ;;  %p490_p11 = scmp.lt.s32.totalorder %s292_s14, %s292_s14 }
 0x12f   :  { %p486_p10 = scmp.ne.s32.totalorder %s292_s14, %s485_s6  ;;  %p491_p12 = scmp.lt.s32.totalorder %s485_s6, %s485_s6 }
 0x131   :  { %p492_p13 = por %p491_p12, %p490_p11 }
 0x133   :  { %p493_p0 = pnand %p492_p13, %p486_p10 }
 0x1f6   :  { %v272_v27 = vpop.f32.mrb[0].mxu1 }
 0x1f7   :  { %v273_v28 = vadd.f32 %v324_v26, %v272_v27  ;;  %v389_v29 = vpop.f32.mrb[1].mxu1 }
 0x1f8   :  { %v275_v30 = vpop.f32.mrb[2].mxu1 }
 0x1f9   :  { %v278_v31 = vsub.f32 0.0, %v273_v28  ;;  %v390_v32 = vpop.f32.mrb[3].mxu1 }
 0x1fb   :  { %v279_v33 = vmul.f32 1.442695, %v278_v31 }
 0x1fd   :  { %415 = vpow2.f32 %v279_v33 }
 0x207   :  { %v416_v34 = vpop.eup %415 }
 0x208   :  { %v281_v35 = vadd.f32 1.0, %v416_v34 }
 0x20a   :  { %417 = vrcp.f32 %v281_v35 }
 0x214   :  { %v418_v36 = vpop.eup %417 }
 0x215   :  { %283 = vst [vmem:[#allocation7] sm:$0xff] %v418_v36 }
 0x216   :  { %496 = shalt.err (!%p493_p0)
}
 0x217   :  { %s497_s16 = scalar_lea.hbm %s620_s5, 128 }
 0x218   :  { %p498_p1 = scmp.ne.s32.totalorder %s620_s5, %s497_s16  ;;  %p501_p2 = scmp.lt.u32.totalorder %s497_s16, %s620_s5 }
 0x21a   :  { %p503_p3 = pnand %p501_p2, %p498_p1 }
 0x21c   :  { %506 = shalt.err (!%p503_p3)
}
 0x21d   :  { %294 = dma.vmem_to_hbm [thread:$0]  %s292_s14, 128, %s620_s5, [#allocation4]  }
 0x21e   :  { %511 = dma.done.wait [#allocation4], 128  }
 0x21f   :  { %512 = vsyncadd [#allocation4], 4294967168 }
 0x220   :  { %513 = dma.done.wait [#allocation9], 128  }
 0x221   :  { %514 = vsyncadd [#allocation9], 4294967168 }
 0x222   :  { %311 = vsyncpa [#allocation3], 1 }
 0x223   :  { %312 = vsyncpa [#allocation6], 1 }
 0x224   :  { %313 = vsyncpa [#allocation4], 1 }
 0x225   :  { %314 = vsyncpa [#allocation9], 1 }

</bundles_post_ra>
